<compile_context>
chip_gen: v7x
topology: tpu7x:2x2x1
jax: 0.10.0
libtpu: 0.0.40
codegen_flags: <defaults>
</compile_context>

<pallas_src>
import jax
import jax.numpy as jnp
from jax import lax
from jax.experimental import pallas as pl
from jax.experimental.pallas import tpu as pltpu


def _round_up(x, m):
    return (x + m - 1) // m * m


def _linear_nobias_kernel(x_ref, wt_ref, o_ref):
    # x_ref:  (tile_m, F) f32   -- cast to bf16 in-register (free under DMA/MXU)
    # wt_ref: (F, O)      bf16  -- resident, pre-transposed weight (W^T)
    # o_ref:  (tile_m, O) out_dtype
    x_bf = x_ref[...].astype(jnp.bfloat16)
    o_ref[...] = jnp.dot(
        x_bf, wt_ref[...], preferred_element_type=jnp.float32
    ).astype(o_ref.dtype)


def _vmem_limit_bytes():
    """Generation-aware scoped-VMEM limit: ~half of physical per-TC VMEM.
    v7x (64 MiB physical) -> 32 MiB; v5e/v6e (128 MiB) -> 64 MiB."""
    cap = None
    try:
        cap = pltpu.get_tpu_info().vmem_capacity_bytes
    except Exception:
        cap = None
    if not cap:
        cap = 64 * 1024 * 1024  # conservative (v7x-sized) fallback
    return int(min(cap // 2, 64 * 1024 * 1024))


def _choose_tile_m(m_rows, f_in, o_out, out_bytes, budget_bytes):
    """Row-tile size: as large as the VMEM budget allows, a multiple of 8,
    never over-shooting M, and (for large M) leaving >= 4 grid steps so v7x
    can shard/pipeline row tiles across its 2 TensorCores."""
    per_row = 2 * (f_in * 4 + o_out * out_bytes)   # double-buffered f32 x + out rows
    w_bytes = 2 * (f_in * o_out * 2)               # bf16 resident weight (x2 buffers)
    fit = max((budget_bytes - w_bytes) // max(per_row, 1), 8)
    fit = int(fit) // 8 * 8                        # sublane multiple, budget-clamped

    if m_rows <= 1024 and m_rows <= fit:
        return max(_round_up(m_rows, 8), 8)        # single step, no over-tiling

    tile = min(fit, 16 * 1024, max(_round_up(pl.cdiv(m_rows, 4), 8), 8))
    if tile >= 512:
        tile = tile // 512 * 512
    return max(int(tile), 8)


def _motion_encoder_pallas(x2d, weight, out_dtype):
    M, F_in = x2d.shape
    O = weight.shape[0]
    out_bytes = jnp.dtype(out_dtype).itemsize

    vmem_limit = _vmem_limit_bytes()
    budget = max(vmem_limit - 8 * 1024 * 1024, vmem_limit * 3 // 4)
    tile_m = _choose_tile_m(M, F_in, O, out_bytes, budget)
    grid = (pl.cdiv(M, tile_m),)

    # One-time, few-KiB transform: bf16 + transpose -> (F, O) so the resident
    # RHS is consumed with a standard contraction (no per-step relayout risk).
    w_t = weight.astype(jnp.bfloat16).T

    cost = pl.CostEstimate(
        flops=2 * M * F_in * O,
        transcendentals=0,
        bytes_accessed=(M * F_in * x2d.dtype.itemsize   # f32 x read
                        + F_in * O * 2                  # bf16 weight read
                        + M * O * out_bytes),           # output write
    )

    return pl.pallas_call(
        _linear_nobias_kernel,
        out_shape=jax.ShapeDtypeStruct((M, O), out_dtype),
        grid_spec=pl.GridSpec(
            grid=grid,
            in_specs=[
                pl.BlockSpec((tile_m, F_in), lambda i: (i, 0)),  # row tiles of x (f32)
                pl.BlockSpec((F_in, O), lambda i: (0, 0)),       # resident W^T (bf16)
            ],
            out_specs=pl.BlockSpec((tile_m, O), lambda i: (i, 0)),
        ),
        compiler_params=pltpu.CompilerParams(
            dimension_semantics=("parallel",),  # shard row tiles over TCs (v7x)
            vmem_limit_bytes=vmem_limit,
        ),
        cost_estimate=cost,
    )(x2d, w_t)


def motion_encoder_forward(x, weight, *, out_dtype=None, force_pallas=False):
    """Pallas implementation of MotionEncoder.forward.

    Args:
      x:      (B, T, F) input features.
      weight: (O, F) nn.Linear weight (PyTorch out x in layout), bias=False.
      out_dtype: output dtype; defaults to x.dtype (set jnp.bfloat16 to halve
                 output HBM traffic if downstream tolerates it).

    Returns:
      (B, T, O) array.
    """
    B, T, F_in = x.shape
    O, F_w = weight.shape
    assert F_w == F_in
    M = B * T
    x2d = x.reshape(M, F_in)
    out_dtype = x.dtype if out_dtype is None else out_dtype

    # Tiny problems are 100% launch/DMA-latency bound -> let XLA fuse the dot.
    if not force_pallas and M < 1024:
        y2d = lax.dot_general(
            x2d.astype(jnp.bfloat16), weight.astype(jnp.bfloat16),
            dimension_numbers=(((1,), (1,)), ((), ())),
            preferred_element_type=jnp.float32,
        ).astype(out_dtype)
        return y2d.reshape(B, T, O)

    y2d = _motion_encoder_pallas(x2d, weight, out_dtype)
    return y2d.reshape(B, T, O)


if __name__ == "__main__":
    # Small, module-consistent shapes: batch=2, seq(T)=8, input_dims=32,
    # output_dims=64 (encoder_hidden_dims is unused in forward).
    B, T = 2, 8
    input_dims = 32
    output_dims = 64

    key = jax.random.PRNGKey(0)
    kx, kw = jax.random.split(key)

    x = jax.random.normal(kx, (B, T, input_dims), dtype=jnp.float32)
    # Deterministic synthetic Linear weight, PyTorch layout (out, in), bias=False.
    weight = jax.random.normal(kw, (output_dims, input_dims), dtype=jnp.float32) * 0.02

    # Force the Pallas path so the kernel is exercised even at demo size.
    y = motion_encoder_forward(x, weight, force_pallas=True)
    jax.block_until_ready(y)
    assert y.shape == (B, T, output_dims)
    assert y.dtype == x.dtype

    # Reference with the same bf16-compute / f32-accumulate semantics.
    x_bf = x.reshape(B * T, input_dims).astype(jnp.bfloat16)
    w_bf = weight.astype(jnp.bfloat16)
    y_ref_bf = lax.dot_general(
        x_bf, w_bf, dimension_numbers=(((1,), (1,)), ((), ())),
        preferred_element_type=jnp.float32,
    ).astype(x.dtype).reshape(B, T, output_dims)
    assert jnp.allclose(y, y_ref_bf, atol=1e-3, rtol=1e-3)

    # Loose sanity check against the full-precision PyTorch-equivalent reference.
    y_ref_f32 = (x.reshape(B * T, input_dims) @ weight.T).reshape(B, T, output_dims)
    assert jnp.allclose(y, y_ref_f32, atol=1e-2, rtol=1e-2)

    print("KERNEL_OK")
</pallas_src>

<mosaic_0001>
module attributes {stable_mosaic.version = 11 : i64} {
  func.func @_linear_nobias_kernel(%arg0: i32, %arg1: memref<16x32xf32, #tpu.memory_space<vmem>>, %arg2: memref<32x64xbf16, #tpu.memory_space<vmem>>, %arg3: memref<16x64xf32, #tpu.memory_space<vmem>>) attributes {dimension_semantics = [#tpu.dimension_semantics<parallel>], iteration_bounds = array<i64: 1>, scalar_prefetch = 0 : i64, scratch_operands = 0 : i64, tpu.core_type = #tpu.core_type<tc>, window_params = [{transform_indices = @transform_0, window_bounds = array<i64: 16, 32>}, {pipeline_mode = #tpu.pipeline_mode<synchronous>, transform_indices = @transform_1, window_bounds = array<i64: 32, 64>}, {transform_indices = @transform_2, window_bounds = array<i64: 16, 64>}]} {
    %c0 = arith.constant 0 : index
    %c0_0 = arith.constant 0 : index
    %0 = vector.load %arg1[%c0, %c0_0] : memref<16x32xf32, #tpu.memory_space<vmem>>, vector<16x32xf32>
    %1 = arith.truncf %0 : vector<16x32xf32> to vector<16x32xbf16>
    %c0_1 = arith.constant 0 : index
    %c0_2 = arith.constant 0 : index
    %2 = vector.load %arg2[%c0_1, %c0_2] : memref<32x64xbf16, #tpu.memory_space<vmem>>, vector<32x64xbf16>
    %cst = arith.constant dense<0.000000e+00> : vector<16x64xf32>
    %3 = tpu.matmul %1, %2, %cst {dimension_numbers = #tpu.dot_dimension_numbers<[1], [0], [0], [1], [0, 0, 1, 1], [], []>} : vector<16x32xbf16>, vector<32x64xbf16>, vector<16x64xf32> -> vector<16x64xf32>
    %c0_3 = arith.constant 0 : index
    %c0_4 = arith.constant 0 : index
    %4 = vector.load %arg3[%c0_3, %c0_4] : memref<16x64xf32, #tpu.memory_space<vmem>>, vector<16x64xf32>
    tpu.vector_store %arg3[%c0_3, %c0_4], %3 {strides = array<i32>} : memref<16x64xf32, #tpu.memory_space<vmem>>, vector<16x64xf32>,
    return
  }
  func.func @transform_0(%arg0: i32) -> (i32, i32) {
    %c0_i32 = arith.constant 0 : i32
    %c0_i32_0 = arith.constant 0 : i32
    return %arg0, %c0_i32 : i32, i32
  }
  func.func @transform_1(%arg0: i32) -> (i32, i32) {
    %c0_i32 = arith.constant 0 : i32
    %c0_i32_0 = arith.constant 0 : i32
    %c0_i32_1 = arith.constant 0 : i32
    return %c0_i32, %c0_i32_0 : i32, i32
  }
  func.func @transform_2(%arg0: i32) -> (i32, i32) {
    %c0_i32 = arith.constant 0 : i32
    %c0_i32_0 = arith.constant 0 : i32
    return %arg0, %c0_i32 : i32, i32
  }
}

</mosaic_0001>

<bundles_post_ra>
// kernel: tpu_custom_call.1
= control target key start
LH: loop header
LB: loop body
LE: loop exit
PB: predicated region body
PF: predicated region fallthrough
CT: control target
= control target key end

     0   :  { %7 = vsyncpa [#allocation3], 0  ;;  %s289_s0 = inlined_call_operand.hbm [shape: f32[16,32], index: 0, kind: input, shape index: {}]   ;;  %s290_s1 = inlined_call_operand.hbm [shape: bf16[32,64], index: 1, kind: input, shape index: {}]   ;;  %s291_s2 = inlined_call_operand.hbm [shape: f32[16,64], index: 2, kind: output, shape index: {}]  }
   0x1   :  { %8 = vsyncpa [#allocation6], 0 }
   0x2   :  { %9 = vsyncpa [#allocation4], 0  ;;  %s223_s9 = smov [#allocation2]   ;;  %s151_s13 = scalar_lea.hbm %s289_s0, 256 }
   0x3   :  { %s15_s10 = sshll.u32 %s223_s9, 4  ;;  %p152_p0 = scmp.ne.s32.totalorder %s289_s0, %s151_s13  ;;  %s16_s10 = int_to_ptr.vmem [resolvable:$true] %s15_s10 }
   0x4   :  { %p155_p1 = scmp.lt.u32.totalorder %s151_s13, %s289_s0 }
   0x6   :  { %p157_p2 = pnand %p155_p1, %p152_p0 }
   0x8   :  { %160 = shalt.err (!%p157_p2)
}
   0x9   :  { %s161_s18 = scalar_lea.vmem %s16_s10, 256  ;;  %p166_p4 = scmp.lt.s32.totalorder %s16_s10, %s16_s10 }
   0xa   :  { %p162_p3 = scmp.ne.s32.totalorder %s16_s10, %s161_s18  ;;  %p167_p5 = scmp.lt.s32.totalorder %s161_s18, %s161_s18 }
   0xc   :  { %p168_p6 = por %p167_p5, %p166_p4 }
   0xe   :  { %p169_p7 = pnand %p168_p6, %p162_p3 }
  0x10   :  { %172 = shalt.err (!%p169_p7)
}
  0x11   :  { %s224_s19 = smov 128   ;;  %s225_s20 = smov 8  }
  0x12   :  { %21 = dma.hbm_to_vmem [thread:$0]  %s289_s0, 256, %s16_s10, [#allocation3], %s224_s19, %s224_s19, %s225_s20  }
  0x13   :  { %s226_s23 = smov [#allocation5]   ;;  %s173_s27 = scalar_lea.hbm %s290_s1, 256 }
  0x14   :  { %s27_s24 = sshll.u32 %s226_s23, 4  ;;  %p174_p8 = scmp.ne.s32.totalorder %s290_s1, %s173_s27  ;;  %s28_s24 = int_to_ptr.vmem [resolvable:$true] %s27_s24 }
  0x15   :  { %p177_p9 = scmp.lt.u32.totalorder %s173_s27, %s290_s1 }
  0x17   :  { %p179_p10 = pnand %p177_p9, %p174_p8 }
  0x19   :  { %182 = shalt.err (!%p179_p10)
}
  0x1a   :  { %s183_s4 = scalar_lea.vmem %s28_s24, 256  ;;  %p188_p12 = scmp.lt.s32.totalorder %s28_s24, %s28_s24 }
  0x1b   :  { %p184_p11 = scmp.ne.s32.totalorder %s28_s24, %s183_s4  ;;  %p189_p13 = scmp.lt.s32.totalorder %s183_s4, %s183_s4 }
  0x1d   :  { %p190_p0 = por %p189_p13, %p188_p12 }
  0x1f   :  { %p191_p1 = pnand %p190_p0, %p184_p11 }
  0x21   :  { %194 = shalt.err (!%p191_p1)
}
  0x22   :  { %s227_s0 = smov 64   ;;  %s228_s5 = smov 4  }
  0x23   :  { %33 = dma.hbm_to_vmem [thread:$0]  %s290_s1, 256, %s28_s24, [#allocation6], %s227_s0, %s227_s0, %s228_s5  }
  0x24   :  { %217 = dma.done.wait [#allocation3], 256  }
  0x25   :  { %218 = vsyncadd [#allocation3], 4294967040 }
  0x26   :  { %219 = dma.done.wait [#allocation6], 256  }
  0x27   :  { %220 = vsyncadd [#allocation6], 4294967040  ;;  %v229_v0 = vmov 0.0   ;;  %vm230_vm0 = vmmov 0   ;;  %v149_v1 = vld [vmem:[#allocation5] sm:$0xff]   ;;  %v150_v2 = vld [vmem:[#allocation5 + $0x8] sm:$0xff]  }
  0x28   :  { %132 = vmatprep.subr.bf16.mxu0 %v229_v0  ;;  %136 = vmatprep.mubr.msk.bf16.mxu0 %vm230_vm0, %v229_v0  ;;  %v41_v3 = vld [vmem:[#allocation2] sm:$0xff]  ;;  %v42_v4 = vld [vmem:[#allocation2 + $0x8] sm:$0xff]  ;;  %vm60_vm1 = vcmask 261120   ;;  %vm105_vm2 = vcmask 523264   ;;  %s231_s1 = smov [#allocation7]  }
  0x29   :  { %133 = vmatpush3.bf16.msra.mxu0 %v149_v1  ;;  %v43_v5 = vpack.c.bf16 %v42_v4, %v41_v3  ;;  %s113_s8 = sshll.u32 %s231_s1, 4  ;;  %s114_s8 = int_to_ptr.vmem [resolvable:$true] %s113_s8 }
  0x2a   :  { %134 = vmatprep.subr.bf16.mxu0 %v229_v0  ;;  %s195_s9 = scalar_lea.vmem %s114_s8, 256  ;;  %p200_p3 = scmp.lt.s32.totalorder %s114_s8, %s114_s8 }
  0x2b   :  { %p196_p2 = scmp.ne.s32.totalorder %s114_s8, %s195_s9  ;;  %p201_p4 = scmp.lt.s32.totalorder %s195_s9, %s195_s9 }
  0x2d   :  { %135 = vmatpush3.bf16.msra.mxu0 %v150_v2  ;;  %p202_p5 = por %p201_p4, %p200_p3 }
  0x2f   :  { %p203_p6 = pnand %p202_p5, %p196_p2 }
  0x30   :  { %137 = vmatmul.mubr.msk.bf16.vlgmr.msra.gmra.mrb[0].mxu0 %vm60_vm1, %v43_v5 }
 0x103   :  { %v98_v6 = vpop.f32.mrb[0].mxu0 }
 0x104   :  { %106 = vst.msk [vmem:[#allocation7] sm:$0xff] %vm105_vm2, %v98_v6  ;;  %v138_v7 = vpop.f32.mrb[1].mxu0 }
 0x105   :  { %v101_v8 = vpop.f32.mrb[2].mxu0 }
 0x106   :  { %107 = vst.msk [vmem:[#allocation7 + $0x8] sm:$0xff] %vm105_vm2, %v101_v8  ;;  %v139_v9 = vpop.f32.mrb[3].mxu0 }
 0x107   :  { %206 = shalt.err (!%p203_p6)
}
 0x108   :  { %s207_s12 = scalar_lea.hbm %s291_s2, 256 }
 0x109   :  { %p208_p7 = scmp.ne.s32.totalorder %s291_s2, %s207_s12  ;;  %p211_p8 = scmp.lt.u32.totalorder %s207_s12, %s291_s2 }
 0x10b   :  { %p213_p9 = pnand %p211_p8, %p208_p7 }
 0x10d   :  { %216 = shalt.err (!%p213_p9)
}
 0x10e   :  { %119 = dma.vmem_to_hbm [thread:$0]  %s114_s8, 256, %s291_s2, [#allocation4], %s224_s19, %s224_s19, %s225_s20  }
 0x10f   :  { %221 = dma.done.wait [#allocation4], 256  }
 0x110   :  { %222 = vsyncadd [#allocation4], 4294967040 }
 0x111   :  { %123 = vsyncpa [#allocation3], 1 }
 0x112   :  { %124 = vsyncpa [#allocation6], 1 }
 0x113   :  { %125 = vsyncpa [#allocation4], 1 }

</bundles_post_ra>
